<compile_context>
chip_gen: v7x
topology: tpu7x:2x2x1
jax: 0.10.0
libtpu: 0.0.40
codegen_flags: <defaults>
</compile_context>

<pallas_src>
import math
from functools import partial

import jax
import jax.numpy as jnp
from jax import lax
from jax.experimental import pallas as pl
from jax.experimental.pallas import tpu as pltpu


_VMEM_LIMIT = 32 * 1024 * 1024  # conservative scoped-VMEM cap (fits v5e/v6e/v7x)


def _pick_tile(dim, target, align):
    """Largest tile <= target that divides `dim` and is a multiple of `align`.
    Falls back to the full dim (always a legal block shape)."""
    if dim <= target:
        return dim
    t = (target // align) * align
    while t >= align:
        if dim % t == 0:
            return t
        t -= align
    return dim


# --------------------------- tiled NT matmul (A @ W^T) ------------------------------------

def _matmul_nt_kernel(a_ref, w_ref, o_ref, acc_ref):
    # a: (tm, tk), w: (tn, tk)  -> o: (tm, tn); K-reduction over grid axis 2.
    @pl.when(pl.program_id(2) == 0)
    def _init():
        acc_ref[...] = jnp.zeros_like(acc_ref)

    acc_ref[...] += lax.dot_general(
        a_ref[...], w_ref[...],
        dimension_numbers=(((1,), (1,)), ((), ())),   # contract the K dims directly
        preferred_element_type=jnp.float32)

    @pl.when(pl.program_id(2) == pl.num_programs(2) - 1)
    def _store():
        o_ref[...] = acc_ref[...].astype(o_ref.dtype)


def pallas_matmul_nt(a, w, *, tm_target=256, tn_target=256, tk_target=512):
    """a: (M, K), w: (N, K)  ->  (M, N) = a @ w.T  (w stays in PyTorch (out,in) layout)."""
    M, K = a.shape
    N, K2 = w.shape
    assert K == K2
    tm = _pick_tile(M, tm_target, 8)
    tn = _pick_tile(N, tn_target, 128)
    tk = _pick_tile(K, tk_target, 128)
    grid = (M // tm, N // tn, K // tk)

    cost = pl.CostEstimate(
        flops=int(2 * M * N * K),
        transcendentals=0,
        bytes_accessed=int((M * K + N * K) * a.dtype.itemsize + M * N * a.dtype.itemsize))

    return pl.pallas_call(
        _matmul_nt_kernel,
        out_shape=jax.ShapeDtypeStruct((M, N), a.dtype),
        grid=grid,
        in_specs=[pl.BlockSpec((tm, tk), lambda i, j, k: (i, k)),
                  pl.BlockSpec((tn, tk), lambda i, j, k: (j, k))],
        out_specs=pl.BlockSpec((tm, tn), lambda i, j, k: (i, j)),
        scratch_shapes=[pltpu.VMEM((tm, tn), jnp.float32)],
        compiler_params=pltpu.CompilerParams(
            dimension_semantics=("parallel", "parallel", "arbitrary"),
            vmem_limit_bytes=_VMEM_LIMIT),
        cost_estimate=cost,
    )(a, w)


# --------------------------- flash causal attention (+ fused RoPE) -------------------------

def _flash_attn_kernel(q_ref, k_ref, v_ref,
                       cos_q_ref, sin_q_ref, cos_k_ref, sin_k_ref, smat_ref,
                       o_ref,
                       qrot_ref, m_ref, l_ref, acc_ref,
                       *, scale, use_rope):
    qi = pl.program_id(1)
    ki = pl.program_id(2)
    tq = q_ref.shape[1]
    tkv = k_ref.shape[1]

    q_start = qi * tq
    kv_start = ki * tkv

    def _rope(x, cos_b, sin_b):
        # interleaved-pair rotation via a signed pair-swap matmul:
        #   out = x * cosF + (x @ S) * sinF,   (x@S)[:,2j] = -x[:,2j+1], (x@S)[:,2j+1] = x[:,2j]
        xf = x.astype(jnp.float32)
        x_sw = jnp.dot(xf, smat_ref[...], preferred_element_type=jnp.float32)
        return (xf * cos_b + x_sw * sin_b).astype(x.dtype)

    @pl.when(ki == 0)
    def _init():
        m_ref[...] = jnp.full_like(m_ref, -jnp.inf)
        l_ref[...] = jnp.zeros_like(l_ref)
        acc_ref[...] = jnp.zeros_like(acc_ref)
        # RoPE on the q tile, once per (batch*head, q-block)
        if use_rope:
            qrot_ref[...] = _rope(q_ref[0], cos_q_ref[...], sin_q_ref[...])
        else:
            qrot_ref[...] = q_ref[0]

    # Skip blocks entirely above the causal diagonal (roughly halves MXU work).
    @pl.when(kv_start <= q_start + tq - 1)
    def _update():
        if use_rope:
            k_rot = _rope(k_ref[0], cos_k_ref[...], sin_k_ref[...])
        else:
            k_rot = k_ref[0]

        # scores: contract head dims directly (no k.T relayout on the XLU)
        s = lax.dot_general(
            qrot_ref[...], k_rot,
            dimension_numbers=(((1,), (1,)), ((), ())),
            preferred_element_type=jnp.float32) * scale            # (tq, tkv)

        # causal mask (finite fill so fully-masked rows inside a diagonal block stay NaN-free)
        # TODO(synk): interior (fully-unmasked) blocks could skip the iota+select entirely.
        row = q_start + lax.broadcasted_iota(jnp.int32, (tq, tkv), 0)
        col = kv_start + lax.broadcasted_iota(jnp.int32, (tq, tkv), 1)
        s = jnp.where(col <= row, s, -1e30)

        m_prev = m_ref[...]
        m_new = jnp.maximum(m_prev, jnp.max(s, axis=-1, keepdims=True))
        alpha = jnp.exp(m_prev - m_new)
        p = jnp.exp(s - m_new)

        l_ref[...] = alpha * l_ref[...] + jnp.sum(p, axis=-1, keepdims=True)
        pv = jnp.dot(p.astype(v_ref.dtype), v_ref[0], preferred_element_type=jnp.float32)
        acc_ref[...] = alpha * acc_ref[...] + pv
        m_ref[...] = m_new

    @pl.when(ki == pl.num_programs(2) - 1)
    def _finalize():
        l = l_ref[...]
        inv_l = pl.reciprocal(l, approx=True)
        inv_l = inv_l * (2.0 - l * inv_l)          # one Newton step: keeps EUP path, ~exact
        o_ref[0] = (acc_ref[...] * inv_l).astype(o_ref.dtype)


def pallas_flash_attention(q, k, v, cos_f, sin_f, smat, *, use_rope,
                           tq_target=128, tkv_target=512):
    """q, k, v: (B*H, T, hd); cos_f/sin_f: (T, hd) f32; smat: (hd, hd) f32."""
    BH, T, hd = q.shape
    scale = 1.0 / math.sqrt(hd)
    tq = _pick_tile(T, tq_target, 8)
    tkv = _pick_tile(T, tkv_target, 8)
    grid = (BH, T // tq, T // tkv)

    q_spec = pl.BlockSpec((1, tq, hd), lambda bh, qi, ki: (bh, qi, 0))
    kv_spec = pl.BlockSpec((1, tkv, hd), lambda bh, qi, ki: (bh, ki, 0))
    cq_spec = pl.BlockSpec((tq, hd), lambda bh, qi, ki: (qi, 0))
    ck_spec = pl.BlockSpec((tkv, hd), lambda bh, qi, ki: (ki, 0))
    s_spec = pl.BlockSpec((hd, hd), lambda bh, qi, ki: (0, 0))

    cost = pl.CostEstimate(
        flops=int(2 * BH * T * T * hd),              # ~causal half of QK^T + PV
        transcendentals=int(BH * T * T // 2),
        bytes_accessed=int(4 * BH * T * hd * q.dtype.itemsize))

    return pl.pallas_call(
        partial(_flash_attn_kernel, scale=scale, use_rope=use_rope),
        out_shape=jax.ShapeDtypeStruct((BH, T, hd), q.dtype),
        grid=grid,
        in_specs=[q_spec, kv_spec, kv_spec,
                  cq_spec, cq_spec, ck_spec, ck_spec, s_spec],
        out_specs=q_spec,
        scratch_shapes=[
            pltpu.VMEM((tq, hd), q.dtype),      # RoPE-rotated q tile (written at ki == 0)
            pltpu.VMEM((tq, 1), jnp.float32),   # running row max
            pltpu.VMEM((tq, 1), jnp.float32),   # running row sum
            pltpu.VMEM((tq, hd), jnp.float32),  # output accumulator
        ],
        compiler_params=pltpu.CompilerParams(
            dimension_semantics=("parallel", "parallel", "arbitrary"),
            vmem_limit_bytes=_VMEM_LIMIT),
        cost_estimate=cost,
    )(q, k, v, cos_f, sin_f, cos_f, sin_f, smat)


# --------------------------- module forward ------------------------------------------------

def causal_self_attention(x, w_attn, w_proj, *, n_head, use_rope=True, rope_base=10000.0):
    """Forward pass matching the PyTorch CausalSelfAttention (eval mode).

    x:       (B, T, C)
    w_attn:  (3C, C)   -- nn.Linear(C, 3C, bias=False).weight (PyTorch (out, in) layout)
    w_proj:  (C, C)    -- nn.Linear(C, C,  bias=False).weight
    """
    B, T, C = x.shape
    hd = C // n_head

    # --- QKV projection: tiled NT matmul, weight consumed in (out, in) layout ---
    qkv = pallas_matmul_nt(x.reshape(B * T, C), w_attn)       # (B*T, 3C)
    qkv = qkv.reshape(B, T, 3, n_head, hd)                     # free view, no copy

    # TODO(synk): these transposes are XLA HBM copies; eliminating them needs head-batched
    # BlockSpecs (sub-128 minor block dims for small hd) — left as glue for robustness.
    q = qkv[:, :, 0].transpose(0, 2, 1, 3).reshape(B * n_head, T, hd)
    k = qkv[:, :, 1].transpose(0, 2, 1, 3).reshape(B * n_head, T, hd)
    v = qkv[:, :, 2].transpose(0, 2, 1, 3).reshape(B * n_head, T, hd)

    # --- RoPE tables (float32 for precision; rotation itself is fused into the kernel) ---
    if use_rope:
        d = hd // 2
        theta = 1.0 / (rope_base ** (2.0 * jnp.arange(d, dtype=jnp.float32) / hd))
        t = jnp.arange(T, dtype=jnp.float32)
        freqs = jnp.outer(t, theta)                                    # (T, d) f32
        cos_f = jnp.repeat(jnp.cos(freqs), 2, axis=-1)                 # (T, hd)
        sin_f = jnp.repeat(jnp.sin(freqs), 2, axis=-1)                 # (T, hd)
        # signed pair-swap matrix S: (x @ S)[:,2j] = -x[:,2j+1], (x @ S)[:,2j+1] = +x[:,2j]
        i_in = jnp.arange(hd)[:, None]
        j_out = jnp.arange(hd)[None, :]
        smat = (jnp.where((j_out % 2 == 0) & (i_in == j_out + 1), -1.0, 0.0)
                + jnp.where((j_out % 2 == 1) & (i_in == j_out - 1), 1.0, 0.0)
                ).astype(jnp.float32)
    else:
        cos_f = jnp.ones((T, hd), jnp.float32)
        sin_f = jnp.zeros((T, hd), jnp.float32)
        smat = jnp.zeros((hd, hd), jnp.float32)

    # --- flash causal attention (Pallas), RoPE applied in-kernel ---
    y = pallas_flash_attention(q, k, v, cos_f, sin_f, smat, use_rope=use_rope)  # (B*H, T, hd)

    # merge heads: (B*H, T, hd) -> (B, T, C)
    y = y.reshape(B, n_head, T, hd).transpose(0, 2, 1, 3).reshape(B * T, C)

    # --- output projection (tiled NT matmul) ---
    out = pallas_matmul_nt(y, w_proj)                           # (B*T, C)
    return out.reshape(B, T, C)


# --------------------------- pure-jnp reference --------------------------------------------

def _ref_apply_rope(x, cos, sin):
    B, H, T, hd = x.shape
    x_ = x.reshape(B, H, T, hd // 2, 2)
    x0, x1 = x_[..., 0], x_[..., 1]
    x0r = x0 * cos - x1 * sin
    x1r = x0 * sin + x1 * cos
    return jnp.stack([x0r, x1r], axis=-1).reshape(B, H, T, hd)


def _ref_forward(x, w_attn, w_proj, *, n_head, use_rope=True, rope_base=10000.0):
    B, T, C = x.shape
    hd = C // n_head
    qkv = x @ w_attn.T
    q, k, v = jnp.split(qkv, 3, axis=2)
    q = q.reshape(B, T, n_head, hd).transpose(0, 2, 1, 3)
    k = k.reshape(B, T, n_head, hd).transpose(0, 2, 1, 3)
    v = v.reshape(B, T, n_head, hd).transpose(0, 2, 1, 3)
    if use_rope:
        d = hd // 2
        theta = 1.0 / (rope_base ** (2.0 * jnp.arange(d, dtype=jnp.float32) / hd))
        freqs = jnp.outer(jnp.arange(T, dtype=x.dtype), theta.astype(x.dtype))
        q = _ref_apply_rope(q, jnp.cos(freqs), jnp.sin(freqs))
        k = _ref_apply_rope(k, jnp.cos(freqs), jnp.sin(freqs))
    s = jnp.einsum("bhqd,bhkd->bhqk", q, k) / math.sqrt(hd)
    mask = jnp.tril(jnp.ones((T, T), dtype=bool))
    s = jnp.where(mask, s, -jnp.inf)
    att = jax.nn.softmax(s, axis=-1)
    y = jnp.einsum("bhqk,bhkd->bhqd", att, v)
    y = y.transpose(0, 2, 1, 3).reshape(B, T, C)
    return y @ w_proj.T


# --------------------------- main -----------------------------------------------------------

if __name__ == "__main__":
    # small config consistent with the module: n_embd=32, n_head=4, T=8, B=2
    B, T, C, n_head = 2, 8, 32, 4
    rope_base = 10000.0

    key = jax.random.PRNGKey(0)
    kx, ka, kp = jax.random.split(key, 3)
    x = jax.random.normal(kx, (B, T, C), dtype=jnp.float32)
    # PyTorch Linear convention: weight shape (out, in)
    w_attn = jax.random.normal(ka, (3 * C, C), dtype=jnp.float32) * 0.02
    w_proj = jax.random.normal(kp, (C, C), dtype=jnp.float32) * 0.02

    fwd = jax.jit(partial(causal_self_attention, n_head=n_head,
                          use_rope=True, rope_base=rope_base))
    y = fwd(x, w_attn, w_proj)
    jax.block_until_ready(y)

    y_ref = _ref_forward(x, w_attn, w_proj, n_head=n_head,
                         use_rope=True, rope_base=rope_base)
    assert y.shape == (B, T, C)
    assert jnp.allclose(y, y_ref, atol=2e-4, rtol=2e-4), "mismatch vs reference"

    print("KERNEL_OK")
</pallas_src>

<mosaic_0001>
module attributes {stable_mosaic.version = 11 : i64} {
  func.func @_matmul_nt_kernel(%arg0: i32, %arg1: i32, %arg2: i32, %arg3: memref<16x32xf32, #tpu.memory_space<vmem>>, %arg4: memref<96x32xf32, #tpu.memory_space<vmem>>, %arg5: memref<16x96xf32, #tpu.memory_space<vmem>>, %arg6: memref<16x96xf32, #tpu.memory_space<vmem>>) attributes {dimension_semantics = [#tpu.dimension_semantics<parallel>, #tpu.dimension_semantics<parallel>, #tpu.dimension_semantics<arbitrary>], iteration_bounds = array<i64: 1, 1, 1>, scalar_prefetch = 0 : i64, scratch_operands = 1 : i64, tpu.core_type = #tpu.core_type<tc>, window_params = [{transform_indices = @transform_0, window_bounds = array<i64: 16, 32>}, {transform_indices = @transform_1, window_bounds = array<i64: 96, 32>}, {transform_indices = @transform_2, window_bounds = array<i64: 16, 96>}]} {
    %c0_i32 = arith.constant 0 : i32
    %0 = arith.cmpi eq, %arg2, %c0_i32 : i32
    %1 = arith.extui %0 : i1 to i32
    %c0_i32_0 = arith.constant 0 : i32
    %2 = arith.cmpi ne, %1, %c0_i32_0 : i32
    scf.if %2 {
      %cst_10 = arith.constant 0.000000e+00 : f32
      %12 = vector.broadcast %cst_10 : f32 to vector<16x96xf32>
      %c0_11 = arith.constant 0 : index
      %c0_12 = arith.constant 0 : index
      %13 = vector.load %arg6[%c0_11, %c0_12] : memref<16x96xf32, #tpu.memory_space<vmem>>, vector<16x96xf32>
      tpu.vector_store %arg6[%c0_11, %c0_12], %12 {strides = array<i32>} : memref<16x96xf32, #tpu.memory_space<vmem>>, vector<16x96xf32>,
    } else {
    }
    %c0 = arith.constant 0 : index
    %c0_1 = arith.constant 0 : index
    %3 = vector.load %arg6[%c0, %c0_1] : memref<16x96xf32, #tpu.memory_space<vmem>>, vector<16x96xf32>
    %c0_2 = arith.constant 0 : index
    %c0_3 = arith.constant 0 : index
    %4 = vector.load %arg3[%c0_2, %c0_3] : memref<16x32xf32, #tpu.memory_space<vmem>>, vector<16x32xf32>
    %c0_4 = arith.constant 0 : index
    %c0_5 = arith.constant 0 : index
    %5 = vector.load %arg4[%c0_4, %c0_5] : memref<96x32xf32, #tpu.memory_space<vmem>>, vector<96x32xf32>
    %cst = arith.constant dense<0.000000e+00> : vector<16x96xf32>
    %6 = tpu.matmul %4, %5, %cst {dimension_numbers = #tpu.dot_dimension_numbers<[1], [1], [0], [0], [0, 0, 1, 0], [], []>} : vector<16x32xf32>, vector<96x32xf32>, vector<16x96xf32> -> vector<16x96xf32>
    %7 = arith.addf %3, %6 : vector<16x96xf32>
    %c0_6 = arith.constant 0 : index
    %c0_7 = arith.constant 0 : index
    %8 = vector.load %arg6[%c0_6, %c0_7] : memref<16x96xf32, #tpu.memory_space<vmem>>, vector<16x96xf32>
    tpu.vector_store %arg6[%c0_6, %c0_7], %7 {strides = array<i32>} : memref<16x96xf32, #tpu.memory_space<vmem>>, vector<16x96xf32>,
    %c0_i32_8 = arith.constant 0 : i32
    %9 = arith.cmpi eq, %arg2, %c0_i32_8 : i32
    %10 = arith.extui %9 : i1 to i32
    %c0_i32_9 = arith.constant 0 : i32
    %11 = arith.cmpi ne, %10, %c0_i32_9 : i32
    scf.if %11 {
      %c0_10 = arith.constant 0 : index
      %c0_11 = arith.constant 0 : index
      %12 = vector.load %arg6[%c0_10, %c0_11] : memref<16x96xf32, #tpu.memory_space<vmem>>, vector<16x96xf32>
      %c0_12 = arith.constant 0 : index
      %c0_13 = arith.constant 0 : index
      %13 = vector.load %arg5[%c0_12, %c0_13] : memref<16x96xf32, #tpu.memory_space<vmem>>, vector<16x96xf32>
      tpu.vector_store %arg5[%c0_12, %c0_13], %12 {strides = array<i32>} : memref<16x96xf32, #tpu.memory_space<vmem>>, vector<16x96xf32>,
    } else {
    }
    return
  }
  func.func @transform_0(%arg0: i32, %arg1: i32, %arg2: i32) -> (i32, i32) {
    %c0_i32 = arith.constant 0 : i32
    return %arg0, %arg2 : i32, i32
  }
  func.func @transform_1(%arg0: i32, %arg1: i32, %arg2: i32) -> (i32, i32) {
    %c0_i32 = arith.constant 0 : i32
    return %arg1, %arg2 : i32, i32
  }
  func.func @transform_2(%arg0: i32, %arg1: i32, %arg2: i32) -> (i32, i32) {
    %c0_i32 = arith.constant 0 : i32
    return %arg0, %arg1 : i32, i32
  }
}

module attributes {stable_mosaic.version = 11 : i64} {
  func.func @_flash_attn_kernel(%arg0: i32, %arg1: i32, %arg2: i32, %arg3: memref<1x8x8xf32, #tpu.memory_space<vmem>>, %arg4: memref<1x8x8xf32, #tpu.memory_space<vmem>>, %arg5: memref<1x8x8xf32, #tpu.memory_space<vmem>>, %arg6: memref<8x8xf32, #tpu.memory_space<vmem>>, %arg7: memref<8x8xf32, #tpu.memory_space<vmem>>, %arg8: memref<8x8xf32, #tpu.memory_space<vmem>>, %arg9: memref<8x8xf32, #tpu.memory_space<vmem>>, %arg10: memref<8x8xf32, #tpu.memory_space<vmem>>, %arg11: memref<1x8x8xf32, #tpu.memory_space<vmem>>, %arg12: memref<8x8xf32, #tpu.memory_space<vmem>>, %arg13: memref<8x1xf32, #tpu.memory_space<vmem>>, %arg14: memref<8x1xf32, #tpu.memory_space<vmem>>, %arg15: memref<8x8xf32, #tpu.memory_space<vmem>>) attributes {dimension_semantics = [#tpu.dimension_semantics<parallel>, #tpu.dimension_semantics<parallel>, #tpu.dimension_semantics<arbitrary>], iteration_bounds = array<i64: 8, 1, 1>, scalar_prefetch = 0 : i64, scratch_operands = 4 : i64, tpu.core_type = #tpu.core_type<tc>, window_params = [{transform_indices = @transform_0, window_bounds = array<i64: 1, 8, 8>}, {transform_indices = @transform_1, window_bounds = array<i64: 1, 8, 8>}, {transform_indices = @transform_2, window_bounds = array<i64: 1, 8, 8>}, {transform_indices = @transform_3, window_bounds = array<i64: 8, 8>}, {transform_indices = @transform_4, window_bounds = array<i64: 8, 8>}, {transform_indices = @transform_5, window_bounds = array<i64: 8, 8>}, {transform_indices = @transform_6, window_bounds = array<i64: 8, 8>}, {pipeline_mode = #tpu.pipeline_mode<synchronous>, transform_indices = @transform_7, window_bounds = array<i64: 8, 8>}, {transform_indices = @transform_8, window_bounds = array<i64: 1, 8, 8>}]} {
    %c8_i32 = arith.constant 8 : i32
    %0 = arith.muli %arg1, %c8_i32 : i32
    %c8_i32_0 = arith.constant 8 : i32
    %1 = arith.muli %arg2, %c8_i32_0 : i32
    %c0_i32 = arith.constant 0 : i32
    %2 = arith.cmpi eq, %arg2, %c0_i32 : i32
    %3 = arith.extui %2 : i1 to i32
    %c0_i32_1 = arith.constant 0 : i32
    %4 = arith.cmpi ne, %3, %c0_i32_1 : i32
    scf.if %4 {
      %cst = arith.constant 0xFF800000 : f32
      %13 = vector.broadcast %cst : f32 to vector<8x1xf32>
      %c0 = arith.constant 0 : index
      %c0_6 = arith.constant 0 : index
      %14 = vector.load %arg13[%c0, %c0_6] : memref<8x1xf32, #tpu.memory_space<vmem>>, vector<8x1xf32>
      tpu.vector_store %arg13[%c0, %c0_6], %13 {strides = array<i32>} : memref<8x1xf32, #tpu.memory_space<vmem>>, vector<8x1xf32>,
      %cst_7 = arith.constant 0.000000e+00 : f32
      %15 = vector.broadcast %cst_7 : f32 to vector<8x1xf32>
      %c0_8 = arith.constant 0 : index
      %c0_9 = arith.constant 0 : index
      %16 = vector.load %arg14[%c0_8, %c0_9] : memref<8x1xf32, #tpu.memory_space<vmem>>, vector<8x1xf32>
      tpu.vector_store %arg14[%c0_8, %c0_9], %15 {strides = array<i32>} : memref<8x1xf32, #tpu.memory_space<vmem>>, vector<8x1xf32>,
      %cst_10 = arith.constant 0.000000e+00 : f32
      %17 = vector.broadcast %cst_10 : f32 to vector<8x8xf32>
      %c0_11 = arith.constant 0 : index
      %c0_12 = arith.constant 0 : index
      %18 = vector.load %arg15[%c0_11, %c0_12] : memref<8x8xf32, #tpu.memory_space<vmem>>, vector<8x8xf32>
      tpu.vector_store %arg15[%c0_11, %c0_12], %17 {strides = array<i32>} : memref<8x8xf32, #tpu.memory_space<vmem>>, vector<8x8xf32>,
      %c0_13 = arith.constant 0 : index
      %c0_14 = arith.constant 0 : index
      %c0_15 = arith.constant 0 : index
      %19 = vector.load %arg3[%c0_13, %c0_14, %c0_15] : memref<1x8x8xf32, #tpu.memory_space<vmem>>, vector<1x8x8xf32>
      %20 = vector.shape_cast %19 : vector<1x8x8xf32> to vector<8x8xf32>
      %c0_16 = arith.constant 0 : index
      %c0_17 = arith.constant 0 : index
      %21 = vector.load %arg6[%c0_16, %c0_17] : memref<8x8xf32, #tpu.memory_space<vmem>>, vector<8x8xf32>
      %c0_18 = arith.constant 0 : index
      %c0_19 = arith.constant 0 : index
      %22 = vector.load %arg7[%c0_18, %c0_19] : memref<8x8xf32, #tpu.memory_space<vmem>>, vector<8x8xf32>
      %c0_20 = arith.constant 0 : index
      %c0_21 = arith.constant 0 : index
      %23 = vector.load %arg10[%c0_20, %c0_21] : memref<8x8xf32, #tpu.memory_space<vmem>>, vector<8x8xf32>
      %cst_22 = arith.constant dense<0.000000e+00> : vector<8x8xf32>
      %24 = tpu.matmul %20, %23, %cst_22 {dimension_numbers = #tpu.dot_dimension_numbers<[1], [0], [0], [1], [0, 0, 1, 1], [], []>} : vector<8x8xf32>, vector<8x8xf32>, vector<8x8xf32> -> vector<8x8xf32>
      %25 = arith.mulf %20, %21 : vector<8x8xf32>
      %26 = arith.mulf %24, %22 : vector<8x8xf32>
      %27 = arith.addf %25, %26 : vector<8x8xf32>
      %c0_23 = arith.constant 0 : index
      %c0_24 = arith.constant 0 : index
      %28 = vector.load %arg12[%c0_23, %c0_24] : memref<8x8xf32, #tpu.memory_space<vmem>>, vector<8x8xf32>
      tpu.vector_store %arg12[%c0_23, %c0_24], %27 {strides = array<i32>} : memref<8x8xf32, #tpu.memory_space<vmem>>, vector<8x8xf32>,
    } else {
    }
    %c8_i32_2 = arith.constant 8 : i32
    %5 = arith.addi %0, %c8_i32_2 : i32
    %c1_i32 = arith.constant 1 : i32
    %6 = arith.subi %5, %c1_i32 : i32
    %7 = arith.cmpi sle, %1, %6 : i32
    %8 = arith.extui %7 : i1 to i32
    %c0_i32_3 = arith.constant 0 : i32
    %9 = arith.cmpi ne, %8, %c0_i32_3 : i32
    scf.if %9 {
      %c0 = arith.constant 0 : index
      %c0_6 = arith.constant 0 : index
      %c0_7 = arith.constant 0 : index
      %13 = vector.load %arg4[%c0, %c0_6, %c0_7] : memref<1x8x8xf32, #tpu.memory_space<vmem>>, vector<1x8x8xf32>
      %14 = vector.shape_cast %13 : vector<1x8x8xf32> to vector<8x8xf32>
      %c0_8 = arith.constant 0 : index
      %c0_9 = arith.constant 0 : index
      %15 = vector.load %arg8[%c0_8, %c0_9] : memref<8x8xf32, #tpu.memory_space<vmem>>, vector<8x8xf32>
      %c0_10 = arith.constant 0 : index
      %c0_11 = arith.constant 0 : index
      %16 = vector.load %arg9[%c0_10, %c0_11] : memref<8x8xf32, #tpu.memory_space<vmem>>, vector<8x8xf32>
      %c0_12 = arith.constant 0 : index
      %c0_13 = arith.constant 0 : index
      %17 = vector.load %arg10[%c0_12, %c0_13] : memref<8x8xf32, #tpu.memory_space<vmem>>, vector<8x8xf32>
      %cst = arith.constant dense<0.000000e+00> : vector<8x8xf32>
      %18 = tpu.matmul %14, %17, %cst {dimension_numbers = #tpu.dot_dimension_numbers<[1], [0], [0], [1], [0, 0, 1, 1], [], []>} : vector<8x8xf32>, vector<8x8xf32>, vector<8x8xf32> -> vector<8x8xf32>
      %19 = arith.mulf %14, %15 : vector<8x8xf32>
      %20 = arith.mulf %18, %16 : vector<8x8xf32>
      %21 = arith.addf %19, %20 : vector<8x8xf32>
      %c0_14 = arith.constant 0 : index
      %c0_15 = arith.constant 0 : index
      %22 = vector.load %arg12[%c0_14, %c0_15] : memref<8x8xf32, #tpu.memory_space<vmem>>, vector<8x8xf32>
      %cst_16 = arith.constant dense<0.000000e+00> : vector<8x8xf32>
      %23 = tpu.matmul %22, %21, %cst_16 {dimension_numbers = #tpu.dot_dimension_numbers<[1], [1], [0], [0], [0, 0, 1, 0], [], []>} : vector<8x8xf32>, vector<8x8xf32>, vector<8x8xf32> -> vector<8x8xf32>
      %cst_17 = arith.constant 0.353553385 : f32
      %24 = vector.broadcast %cst_17 : f32 to vector<8x8xf32>
      %25 = arith.mulf %23, %24 : vector<8x8xf32>
      %26 = tpu.iota {dimensions = array<i32: 0>} : vector<8x8xi32>
      %27 = vector.broadcast %0 : i32 to vector<8x8xi32>
      %28 = arith.addi %27, %26 : vector<8x8xi32>
      %29 = tpu.iota {dimensions = array<i32: 1>} : vector<8x8xi32>
      %30 = vector.broadcast %1 : i32 to vector<8x8xi32>
      %31 = arith.addi %30, %29 : vector<8x8xi32>
      %32 = arith.cmpi sle, %31, %28 : vector<8x8xi32>
      %cst_18 = arith.constant -1.000000e+30 : f32
      %33 = vector.broadcast %cst_18 : f32 to vector<8x8xf32>
      %34 = arith.select %32, %25, %33 : vector<8x8xi1>, vector<8x8xf32>
      %c0_19 = arith.constant 0 : index
      %c0_20 = arith.constant 0 : index
      %35 = vector.load %arg13[%c0_19, %c0_20] : memref<8x1xf32, #tpu.memory_space<vmem>>, vector<8x1xf32>
      %cst_21 = arith.constant dense<0xFF800000> : vector<8xf32>
      %36 = vector.multi_reduction <maximumf>, %34, %cst_21 [1] : vector<8x8xf32> to vector<8xf32>
      %37 = vector.shape_cast %36 : vector<8xf32> to vector<8x1xf32>
      %38 = arith.maximumf %35, %37 : vector<8x1xf32>
      %39 = arith.subf %35, %38 : vector<8x1xf32>
      %40 = math.exp %39 : vector<8x1xf32>
      %41 = vector.broadcast %38 : vector<8x1xf32> to vector<8x8xf32>
      %42 = arith.subf %34, %41 : vector<8x8xf32>
      %43 = math.exp %42 : vector<8x8xf32>
      %c0_22 = arith.constant 0 : index
      %c0_23 = arith.constant 0 : index
      %44 = vector.load %arg14[%c0_22, %c0_23] : memref<8x1xf32, #tpu.memory_space<vmem>>, vector<8x1xf32>
      %45 = arith.mulf %40, %44 : vector<8x1xf32>
      %cst_24 = arith.constant dense<0.000000e+00> : vector<8xf32>
      %46 = vector.multi_reduction <add>, %43, %cst_24 [1] : vector<8x8xf32> to vector<8xf32>
      %47 = vector.shape_cast %46 : vector<8xf32> to vector<8x1xf32>
      %48 = arith.addf %45, %47 : vector<8x1xf32>
      %c0_25 = arith.constant 0 : index
      %c0_26 = arith.constant 0 : index
      %49 = vector.load %arg14[%c0_25, %c0_26] : memref<8x1xf32, #tpu.memory_space<vmem>>, vector<8x1xf32>
      tpu.vector_store %arg14[%c0_25, %c0_26], %48 {strides = array<i32>} : memref<8x1xf32, #tpu.memory_space<vmem>>, vector<8x1xf32>,
      %c0_27 = arith.constant 0 : index
      %c0_28 = arith.constant 0 : index
      %c0_29 = arith.constant 0 : index
      %50 = vector.load %arg5[%c0_27, %c0_28, %c0_29] : memref<1x8x8xf32, #tpu.memory_space<vmem>>, vector<1x8x8xf32>
      %51 = vector.shape_cast %50 : vector<1x8x8xf32> to vector<8x8xf32>
      %cst_30 = arith.constant dense<0.000000e+00> : vector<8x8xf32>
      %52 = tpu.matmul %43, %51, %cst_30 {dimension_numbers = #tpu.dot_dimension_numbers<[1], [0], [0], [1], [0, 0, 1, 1], [], []>} : vector<8x8xf32>, vector<8x8xf32>, vector<8x8xf32> -> vector<8x8xf32>
      %c0_31 = arith.constant 0 : index
      %c0_32 = arith.constant 0 : index
      %53 = vector.load %arg15[%c0_31, %c0_32] : memref<8x8xf32, #tpu.memory_space<vmem>>, vector<8x8xf32>
      %54 = vector.broadcast %40 : vector<8x1xf32> to vector<8x8xf32>
      %55 = arith.mulf %54, %53 : vector<8x8xf32>
      %56 = arith.addf %55, %52 : vector<8x8xf32>
      %c0_33 = arith.constant 0 : index
      %c0_34 = arith.constant 0 : index
      %57 = vector.load %arg15[%c0_33, %c0_34] : memref<8x8xf32, #tpu.memory_space<vmem>>, vector<8x8xf32>
      tpu.vector_store %arg15[%c0_33, %c0_34], %56 {strides = array<i32>} : memref<8x8xf32, #tpu.memory_space<vmem>>, vector<8x8xf32>,
      %c0_35 = arith.constant 0 : index
      %c0_36 = arith.constant 0 : index
      %58 = vector.load %arg13[%c0_35, %c0_36] : memref<8x1xf32, #tpu.memory_space<vmem>>, vector<8x1xf32>
      tpu.vector_store %arg13[%c0_35, %c0_36], %38 {strides = array<i32>} : memref<8x1xf32, #tpu.memory_space<vmem>>, vector<8x1xf32>,
    } else {
    }
    %c0_i32_4 = arith.constant 0 : i32
    %10 = arith.cmpi eq, %arg2, %c0_i32_4 : i32
    %11 = arith.extui %10 : i1 to i32
    %c0_i32_5 = arith.constant 0 : i32
    %12 = arith.cmpi ne, %11, %c0_i32_5 : i32
    scf.if %12 {
      %c0 = arith.constant 0 : index
      %c0_6 = arith.constant 0 : index
      %13 = vector.load %arg14[%c0, %c0_6] : memref<8x1xf32, #tpu.memory_space<vmem>>, vector<8x1xf32>
      %14 = tpu.reciprocal %13 {approx = true} : vector<8x1xf32> -> vector<8x1xf32>
      %15 = arith.mulf %13, %14 : vector<8x1xf32>
      %cst = arith.constant 2.000000e+00 : f32
      %16 = vector.broadcast %cst : f32 to vector<8x1xf32>
      %17 = arith.subf %16, %15 : vector<8x1xf32>
      %18 = arith.mulf %14, %17 : vector<8x1xf32>
      %c0_7 = arith.constant 0 : index
      %c0_8 = arith.constant 0 : index
      %19 = vector.load %arg15[%c0_7, %c0_8] : memref<8x8xf32, #tpu.memory_space<vmem>>, vector<8x8xf32>
      %20 = vector.broadcast %18 : vector<8x1xf32> to vector<8x8xf32>
      %21 = arith.mulf %19, %20 : vector<8x8xf32>
      %c0_9 = arith.constant 0 : index
      %c0_10 = arith.constant 0 : index
      %c0_11 = arith.constant 0 : index
      %22 = vector.load %arg11[%c0_9, %c0_10, %c0_11] : memref<1x8x8xf32, #tpu.memory_space<vmem>>, vector<1x8x8xf32>
      %23 = vector.shape_cast %22 : vector<1x8x8xf32> to vector<8x8xf32>
      %24 = vector.shape_cast %21 : vector<8x8xf32> to vector<1x8x8xf32>
      tpu.vector_store %arg11[%c0_9, %c0_10, %c0_11], %24 {strides = array<i32>} : memref<1x8x8xf32, #tpu.memory_space<vmem>>, vector<1x8x8xf32>,
    } else {
    }
    return
  }
  func.func @transform_0(%arg0: i32, %arg1: i32, %arg2: i32) -> (i32, i32, i32) {
    %c0_i32 = arith.constant 0 : i32
    %c0_i32_0 = arith.constant 0 : i32
    return %arg0, %arg1, %c0_i32 : i32, i32, i32
  }
  func.func @transform_1(%arg0: i32, %arg1: i32, %arg2: i32) -> (i32, i32, i32) {
    %c0_i32 = arith.constant 0 : i32
    %c0_i32_0 = arith.constant 0 : i32
    return %arg0, %arg2, %c0_i32 : i32, i32, i32
  }
  func.func @transform_2(%arg0: i32, %arg1: i32, %arg2: i32) -> (i32, i32, i32) {
    %c0_i32 = arith.constant 0 : i32
    %c0_i32_0 = arith.constant 0 : i32
    return %arg0, %arg2, %c0_i32 : i32, i32, i32
  }
  func.func @transform_3(%arg0: i32, %arg1: i32, %arg2: i32) -> (i32, i32) {
    %c0_i32 = arith.constant 0 : i32
    %c0_i32_0 = arith.constant 0 : i32
    return %arg1, %c0_i32 : i32, i32
  }
  func.func @transform_4(%arg0: i32, %arg1: i32, %arg2: i32) -> (i32, i32) {
    %c0_i32 = arith.constant 0 : i32
    %c0_i32_0 = arith.constant 0 : i32
    return %arg1, %c0_i32 : i32, i32
  }
  func.func @transform_5(%arg0: i32, %arg1: i32, %arg2: i32) -> (i32, i32) {
    %c0_i32 = arith.constant 0 : i32
    %c0_i32_0 = arith.constant 0 : i32
    return %arg2, %c0_i32 : i32, i32
  }
  func.func @transform_6(%arg0: i32, %arg1: i32, %arg2: i32) -> (i32, i32) {
    %c0_i32 = arith.constant 0 : i32
    %c0_i32_0 = arith.constant 0 : i32
    return %arg2, %c0_i32 : i32, i32
  }
  func.func @transform_7(%arg0: i32, %arg1: i32, %arg2: i32) -> (i32, i32) {
    %c0_i32 = arith.constant 0 : i32
    %c0_i32_0 = arith.constant 0 : i32
    %c0_i32_1 = arith.constant 0 : i32
    return %c0_i32, %c0_i32_0 : i32, i32
  }
  func.func @transform_8(%arg0: i32, %arg1: i32, %arg2: i32) -> (i32, i32, i32) {
    %c0_i32 = arith.constant 0 : i32
    %c0_i32_0 = arith.constant 0 : i32
    return %arg0, %arg1, %c0_i32 : i32, i32, i32
  }
}

module attributes {stable_mosaic.version = 11 : i64} {
  func.func @_matmul_nt_kernel(%arg0: i32, %arg1: i32, %arg2: i32, %arg3: memref<16x32xf32, #tpu.memory_space<vmem>>, %arg4: memref<32x32xf32, #tpu.memory_space<vmem>>, %arg5: memref<16x32xf32, #tpu.memory_space<vmem>>, %arg6: memref<16x32xf32, #tpu.memory_space<vmem>>) attributes {dimension_semantics = [#tpu.dimension_semantics<parallel>, #tpu.dimension_semantics<parallel>, #tpu.dimension_semantics<arbitrary>], iteration_bounds = array<i64: 1, 1, 1>, scalar_prefetch = 0 : i64, scratch_operands = 1 : i64, tpu.core_type = #tpu.core_type<tc>, window_params = [{transform_indices = @transform_0, window_bounds = array<i64: 16, 32>}, {transform_indices = @transform_1, window_bounds = array<i64: 32, 32>}, {transform_indices = @transform_2, window_bounds = array<i64: 16, 32>}]} {
    %c0_i32 = arith.constant 0 : i32
    %0 = arith.cmpi eq, %arg2, %c0_i32 : i32
    %1 = arith.extui %0 : i1 to i32
    %c0_i32_0 = arith.constant 0 : i32
    %2 = arith.cmpi ne, %1, %c0_i32_0 : i32
    scf.if %2 {
      %cst_10 = arith.constant 0.000000e+00 : f32
      %12 = vector.broadcast %cst_10 : f32 to vector<16x32xf32>
      %c0_11 = arith.constant 0 : index
      %c0_12 = arith.constant 0 : index
      %13 = vector.load %arg6[%c0_11, %c0_12] : memref<16x32xf32, #tpu.memory_space<vmem>>, vector<16x32xf32>
      tpu.vector_store %arg6[%c0_11, %c0_12], %12 {strides = array<i32>} : memref<16x32xf32, #tpu.memory_space<vmem>>, vector<16x32xf32>,
    } else {
    }
    %c0 = arith.constant 0 : index
    %c0_1 = arith.constant 0 : index
    %3 = vector.load %arg6[%c0, %c0_1] : memref<16x32xf32, #tpu.memory_space<vmem>>, vector<16x32xf32>
    %c0_2 = arith.constant 0 : index
    %c0_3 = arith.constant 0 : index
    %4 = vector.load %arg3[%c0_2, %c0_3] : memref<16x32xf32, #tpu.memory_space<vmem>>, vector<16x32xf32>
    %c0_4 = arith.constant 0 : index
    %c0_5 = arith.constant 0 : index
    %5 = vector.load %arg4[%c0_4, %c0_5] : memref<32x32xf32, #tpu.memory_space<vmem>>, vector<32x32xf32>
    %cst = arith.constant dense<0.000000e+00> : vector<16x32xf32>
    %6 = tpu.matmul %4, %5, %cst {dimension_numbers = #tpu.dot_dimension_numbers<[1], [1], [0], [0], [0, 0, 1, 0], [], []>} : vector<16x32xf32>, vector<32x32xf32>, vector<16x32xf32> -> vector<16x32xf32>
    %7 = arith.addf %3, %6 : vector<16x32xf32>
    %c0_6 = arith.constant 0 : index
    %c0_7 = arith.constant 0 : index
    %8 = vector.load %arg6[%c0_6, %c0_7] : memref<16x32xf32, #tpu.memory_space<vmem>>, vector<16x32xf32>
    tpu.vector_store %arg6[%c0_6, %c0_7], %7 {strides = array<i32>} : memref<16x32xf32, #tpu.memory_space<vmem>>, vector<16x32xf32>,
    %c0_i32_8 = arith.constant 0 : i32
    %9 = arith.cmpi eq, %arg2, %c0_i32_8 : i32
    %10 = arith.extui %9 : i1 to i32
    %c0_i32_9 = arith.constant 0 : i32
    %11 = arith.cmpi ne, %10, %c0_i32_9 : i32
    scf.if %11 {
      %c0_10 = arith.constant 0 : index
      %c0_11 = arith.constant 0 : index
      %12 = vector.load %arg6[%c0_10, %c0_11] : memref<16x32xf32, #tpu.memory_space<vmem>>, vector<16x32xf32>
      %c0_12 = arith.constant 0 : index
      %c0_13 = arith.constant 0 : index
      %13 = vector.load %arg5[%c0_12, %c0_13] : memref<16x32xf32, #tpu.memory_space<vmem>>, vector<16x32xf32>
      tpu.vector_store %arg5[%c0_12, %c0_13], %12 {strides = array<i32>} : memref<16x32xf32, #tpu.memory_space<vmem>>, vector<16x32xf32>,
    } else {
    }
    return
  }
  func.func @transform_0(%arg0: i32, %arg1: i32, %arg2: i32) -> (i32, i32) {
    %c0_i32 = arith.constant 0 : i32
    return %arg0, %arg2 : i32, i32
  }
  func.func @transform_1(%arg0: i32, %arg1: i32, %arg2: i32) -> (i32, i32) {
    %c0_i32 = arith.constant 0 : i32
    return %arg1, %arg2 : i32, i32
  }
  func.func @transform_2(%arg0: i32, %arg1: i32, %arg2: i32) -> (i32, i32) {
    %c0_i32 = arith.constant 0 : i32
    return %arg0, %arg1 : i32, i32
  }
}

</mosaic_0001>

<bundles_post_ra>
// kernel: causal_self_attention.3
= control target key start
LH: loop header
LB: loop body
LE: loop exit
PB: predicated region body
PF: predicated region fallthrough
CT: control target
= control target key end

     0   :  { %vm34_vm0 = vcmask 261120   ;;  %vm15_vm1 = vcmask 785408   ;;  %v260_v3 = vmov 0.0   ;;  %s362_s1 = inlined_call_operand.vmem [shape: f32[96,32], index: 1, kind: input, shape index: {}]   ;;  %s363_s0 = inlined_call_operand.vmem [shape: f32[16,32], index: 0, kind: input, shape index: {}]   ;;  %s364_s2 = inlined_call_operand.vmem [shape: f32[16,96], index: 2, kind: output, shape index: {}]  }
   0x1   :  { %v22_v0 = vld [vmem:[%s362_s1] sm:$0xff]  ;;  %v23_v1 = vld [vmem:[%s362_s1 + $0x8] sm:$0xff]  ;;  %vm284_vm2 = vmpackc.low %vm34_vm0, %vm34_vm0  ;;  %17 = vst.msk [vmem:[#allocation2 + $0x8] sm:$0xff] %vm15_vm1, %v260_v3 }
   0x2   :  { %16 = vst.msk [vmem:[#allocation2] sm:$0xff] %vm15_vm1, %v260_v3  ;;  %v223_v4 = vpack.c.bf16 %v23_v1, %v22_v0  ;;  %v24_v5 = vld [vmem:[%s362_s1 + $0x10] sm:$0xff]  ;;  %v25_v6 = vld [vmem:[%s362_s1 + $0x18] sm:$0xff]  ;;  %v20_v8 = vld [vmem:[%s363_s0] sm:$0xff] }
   0x3   :  { %v229_v7 = vpack.c.bf16 %v25_v6, %v24_v5  ;;  %220 = vmatprep.mubr.msk.f32.mxu0 %vm34_vm0, %v20_v8  ;;  %v26_v9 = vld [vmem:[%s362_s1 + $0x20] sm:$0xff]  ;;  %v27_v10 = vld [vmem:[%s362_s1 + $0x28] sm:$0xff]  ;;  %v28_v12 = vld [vmem:[%s362_s1 + $0x30] sm:$0xff] }
   0x4   :  { %225 = vmatprep.subr.msk.bf16.mxu0 %vm284_vm2, %v223_v4  ;;  %v235_v11 = vpack.c.bf16 %v27_v10, %v26_v9  ;;  %v29_v13 = vld [vmem:[%s362_s1 + $0x38] sm:$0xff]  ;;  %v30_v15 = vld [vmem:[%s362_s1 + $0x40] sm:$0xff]  ;;  %v31_v16 = vld [vmem:[%s362_s1 + $0x48] sm:$0xff] }
   0x5   :  { %228 = vmatpush3.bf16.xpose.msk.msra.mxu0 %vm284_vm2, %v223_v4  ;;  %v241_v14 = vpack.c.bf16 %v29_v13, %v28_v12  ;;  %v247_v17 = vpack.c.bf16 %v31_v16, %v30_v15  ;;  %v32_v18 = vld [vmem:[%s362_s1 + $0x50] sm:$0xff]  ;;  %v33_v19 = vld [vmem:[%s362_s1 + $0x58] sm:$0xff]  ;;  %v21_v21 = vld [vmem:[%s363_s0 + $0x8] sm:$0xff] }
   0x6   :  { %231 = vmatprep.subr.msk.bf16.mxu0 %vm284_vm2, %v229_v7  ;;  %v253_v20 = vpack.c.bf16 %v33_v19, %v32_v18 }
   0x8   :  { %v19_v22 = vld [vmem:[#allocation2 + $0x8] sm:$0xff] }
   0x9   :  { %v18_v23 = vld [vmem:[#allocation2] sm:$0xff] }
   0xd   :  { %234 = vmatpush3.bf16.xpose.msk.msra.mxu0 %vm284_vm2, %v229_v7 }
   0xe   :  { %237 = vmatprep.subr.msk.bf16.mxu0 %vm284_vm2, %v235_v11 }
  0x15   :  { %240 = vmatpush3.bf16.xpose.msk.msra.mxu0 %vm284_vm2, %v235_v11 }
  0x16   :  { %243 = vmatprep.subr.msk.bf16.mxu0 %vm284_vm2, %v241_v14 }
  0x1d   :  { %246 = vmatpush3.bf16.xpose.msk.msra.mxu0 %vm284_vm2, %v241_v14 }
  0x1e   :  { %249 = vmatprep.subr.msk.bf16.mxu0 %vm284_vm2, %v247_v17 }
  0x25   :  { %252 = vmatpush3.bf16.xpose.msk.msra.mxu0 %vm284_vm2, %v247_v17 }
  0x26   :  { %255 = vmatprep.subr.msk.bf16.mxu0 %vm284_vm2, %v253_v20 }
  0x2d   :  { %258 = vmatpush3.bf16.xpose.msk.msra.mxu0 %vm284_vm2, %v253_v20 }
  0x34   :  { %221 = vmatmul.mubr.msk.f32.vlgmr.msra.gmra.mrb[0].mxu0 %vm34_vm0, %v21_v21 }
 0x107   :  { %v222_v24 = vpop.f32.mrb[0].mxu0 }
 0x108   :  { %v153_v25 = vadd.f32 %v222_v24, %v19_v22  ;;  %v143_v26 = vpop.f32.mrb[1].mxu0 }
 0x109   :  { %v152_v27 = vadd.f32 %v143_v26, %v18_v23 }
 0x10a   :  { %156 = vst.msk [vmem:[#allocation2 + $0x8] sm:$0xff] %vm15_vm1, %v153_v25 }
 0x10b   :  { %155 = vst.msk [vmem:[#allocation2] sm:$0xff] %vm15_vm1, %v152_v27 }
 0x111   :  { %v161_v28 = vld [vmem:[#allocation2 + $0x8] sm:$0xff] }
 0x112   :  { %163 = vst.msk [vmem:[%s364_s2 + $0x8] sm:$0xff] %vm15_vm1, %v161_v28  ;;  %v160_v29 = vld [vmem:[#allocation2] sm:$0xff] }
 0x113   :  { %162 = vst.msk [vmem:[%s364_s2] sm:$0xff] %vm15_vm1, %v160_v29 }

// kernel: causal_self_attention.5
= control target key start
LH: loop header
LB: loop body
LE: loop exit
PB: predicated region body
PF: predicated region fallthrough
CT: control target
= control target key end

     0   :  { %vm16_vm0 = vcmask 261120   ;;  %v211_v6 = vmov 0.0   ;;  %s270_s0 = inlined_call_operand.vmem [shape: f32[16,32], index: 0, kind: input, shape index: {}]   ;;  %s271_s1 = inlined_call_operand.vmem [shape: f32[32,32], index: 1, kind: input, shape index: {}]   ;;  %s272_s2 = inlined_call_operand.hbm [shape: f32[16,32], index: 2, kind: output, shape index: {}]  }
   0x1   :  { %v23_v0 = vld [vmem:[%s271_s1] sm:$0xff]  ;;  %v24_v1 = vld [vmem:[%s271_s1 + $0x8] sm:$0xff]  ;;  %v25_v2 = vld [vmem:[%s271_s1 + $0x10] sm:$0xff]  ;;  %18 = vst.msk [vmem:[#allocation2 + $0x8] sm:$0xff] %vm16_vm0, %v211_v6 }
   0x2   :  { %v171_v3 = vpack.c.bf16 %v24_v1, %v23_v0  ;;  %vm172_vm1 = vmpackc.low %vm16_vm0, %vm16_vm0  ;;  %v26_v4 = vld [vmem:[%s271_s1 + $0x18] sm:$0xff]  ;;  %v21_v5 = vld [vmem:[%s270_s0] sm:$0xff]  ;;  %17 = vst.msk [vmem:[#allocation2] sm:$0xff] %vm16_vm0, %v211_v6 }
   0x3   :  { %v177_v7 = vpack.c.bf16 %v26_v4, %v25_v2  ;;  %168 = vmatprep.mubr.msk.f32.mxu0 %vm16_vm0, %v21_v5 }
   0x4   :  { %7 = vsyncpa [#allocation4], 0  ;;  %173 = vmatprep.subr.msk.bf16.mxu0 %vm172_vm1, %v171_v3  ;;  %v22_v8 = vld [vmem:[%s270_s0 + $0x8] sm:$0xff]  ;;  %s212_s1 = smov [#allocation3]  }
   0x5   :  { %176 = vmatpush3.bf16.xpose.msk.msra.mxu0 %vm172_vm1, %v171_v3  ;;  %s137_s21 = sshll.u32 %s212_s1, 4  ;;  %s138_s21 = int_to_ptr.vmem [resolvable:$true] %s137_s21 }
   0x6   :  { %179 = vmatprep.subr.msk.bf16.mxu0 %vm172_vm1, %v177_v7  ;;  %s187_s0 = scalar_lea.vmem %s138_s21, 256  ;;  %p192_p1 = scmp.lt.s32.totalorder %s138_s21, %s138_s21 }
   0x7   :  { %p188_p0 = scmp.ne.s32.totalorder %s138_s21, %s187_s0  ;;  %p193_p2 = scmp.lt.s32.totalorder %s187_s0, %s187_s0 }
   0x8   :  { %v20_v9 = vld [vmem:[#allocation2 + $0x8] sm:$0xff] }
   0x9   :  { %v19_v10 = vld [vmem:[#allocation2] sm:$0xff]  ;;  %p194_p3 = por %p193_p2, %p192_p1 }
   0xb   :  { %p195_p4 = pnand %p194_p3, %p188_p0 }
   0xd   :  { %182 = vmatpush3.bf16.xpose.msk.msra.mxu0 %vm172_vm1, %v177_v7 }
  0x14   :  { %169 = vmatmul.mubr.msk.f32.vlgmr.msra.gmra.mrb[0].mxu0 %vm16_vm0, %v22_v8 }
  0xe7   :  { %v170_v11 = vpop.f32.mrb[0].mxu0 }
  0xe8   :  { %v122_v12 = vadd.f32 %v170_v11, %v20_v9  ;;  %v112_v13 = vpop.f32.mrb[1].mxu0 }
  0xe9   :  { %v121_v14 = vadd.f32 %v112_v13, %v19_v10 }
  0xea   :  { %124 = vst.msk [vmem:[#allocation2 + $0x8] sm:$0xff] %vm16_vm0, %v122_v12 }
  0xeb   :  { %123 = vst.msk [vmem:[#allocation2] sm:$0xff] %vm16_vm0, %v121_v14 }
  0xf1   :  { %v129_v15 = vld [vmem:[#allocation2 + $0x8] sm:$0xff] }
  0xf2   :  { %v128_v16 = vld [vmem:[#allocation2] sm:$0xff]  ;;  %131 = vst.msk [vmem:[#allocation3 + $0x8] sm:$0xff] %vm16_vm0, %v129_v15 }
  0xf3   :  { %130 = vst.msk [vmem:[#allocation3] sm:$0xff] %vm16_vm0, %v128_v16 }
  0xf4   :  { %198 = shalt.err (!%p195_p4)
}
  0xf5   :  { %s199_s24 = scalar_lea.hbm %s272_s2, 256 }
  0xf6   :  { %p200_p5 = scmp.ne.s32.totalorder %s272_s2, %s199_s24  ;;  %p203_p6 = scmp.lt.u32.totalorder %s199_s24, %s272_s2 }
  0xf8   :  { %p205_p7 = pnand %p203_p6, %p200_p5 }
  0xfa   :  { %208 = shalt.err (!%p205_p7)
}
  0xfb   :  { %s213_s29 = smov 128   ;;  %s214_s30 = smov 8  }
  0xfc   :  { %143 = dma.vmem_to_hbm [thread:$0]  %s138_s21, 256, %s272_s2, [#allocation4], %s213_s29, %s213_s29, %s214_s30  }
  0xfd   :  { %209 = dma.done.wait [#allocation4], 256  }
  0xfe   :  { %210 = vsyncadd [#allocation4], 4294967040 }
  0xff   :  { %147 = vsyncpa [#allocation4], 1 }

// kernel: causal_self_attention.4
= control target key start
LH: loop header
LB: loop body
LE: loop exit
PB: predicated region body
PF: predicated region fallthrough
CT: control target
= control target key end

     0   :  { %s1179_s27 = smov 0   ;;  %s1181_s28 = smov 0   ;;  %s1258_s0 = inlined_call_operand.vmem [shape: f32[8,8,8], index: 0, kind: input, shape index: {}]   ;;  %s1259_s1 = inlined_call_operand.vmem [shape: f32[8,8,8], index: 1, kind: input, shape index: {}]   ;;  %s1260_s2 = inlined_call_operand.vmem [shape: f32[8,8,8], index: 2, kind: input, shape index: {}]   ;;  %s1261_s3 = inlined_call_operand.vmem [shape: f32[8,8], index: 3, kind: input, shape index: {}, may-alias: {3,5}]   ;;  %s1262_s4 = inlined_call_operand.vmem [shape: f32[8,8], index: 4, kind: input, shape index: {}, may-alias: {4,6}]   ;;  %s1263_s5 = inlined_call_operand.vmem [shape: f32[8,8], index: 5, kind: input, shape index: {}, may-alias: {3,5}]   ;;  %s1264_s6 = inlined_call_operand.vmem [shape: f32[8,8], index: 6, kind: input, shape index: {}, may-alias: {4,6}]   ;;  %s1265_s7 = inlined_call_operand.vmem [shape: f32[8,8], index: 7, kind: input, shape index: {}]   ;;  %s1266_s8 = inlined_call_operand.vmem [shape: f32[8,8,8], index: 8, kind: output, shape index: {}]  }
   0x1   :  { %s1183_s29 = smov 0  }
   0x2 LB: > { %s37_s30 = sadd.s32 1, %s1124_s28  ;;  %p1030_p0 = scmp.ge.s32.totalorder %s1128_s29, 1  ;;  %s1128_s29 = sphi %s1183_s29, %s18_s29   ;;  %s1124_s28 = sphi %s1181_s28, %s1268_s28   ;;  %s1120_s27 = sphi %s1179_s27, %s1267_s27  }
   0x3   : > { %p39_p1 = scmp.ge.s32.totalorder %s37_s30, 8  ;;  %p351_p2 = scmp.lt.s32.totalorder %s1128_s29, 9 }
   0x5   : > { %s1270_s30 = smov (%p39_p1, %s37_s30), 0  ;;  %p352_p3 = pnand %p1030_p0, %p351_p2 }
   0x6   : > { %v477_v0 = vld [vmem:[%s1265_s7] sm:$0xff] (!%p352_p3)  ;;  %p419_p4 = scmp.lt.s32.totalorder (!%p352_p3), %s1120_s27, 7  ;;  %vm472_vm0 = vcmask (!%p352_p3), 64512   ;;  %v1130_v1 = vmov (!%p352_p3), 0.0   ;;  %vm1131_vm1 = vmmov (!%p352_p3), 0   ;;  %vm469_vm2 = vcmask (!%p352_p3), 7168  }
   0x7   : > { %355 = sbr.rel (%p352_p3) target bundleno = 1046 (0x416), region = 52  ;;  %1050 = vmatprep.subr.mxu0 (!%p352_p3), %v1130_v1  ;;  %1052 = vmatprep.mubr.msk.f32.mxu0 (!%p352_p3), %vm1131_vm1, %v1130_v1  ;;  %473 = vst.msk [vmem:[#allocation5] sm:$0xff] (!%p352_p3), %vm472_vm0, %v1130_v1  ;;  %v475_v4 = vld [vmem:[%s1261_s3] sm:$0xff] (!%p352_p3)  ;;  %v1132_v19 = vmov (!%p352_p3), -inf   ;;  %v719_v20 = vlaneseq (!%p352_p3)  ;;  %v1133_v28 = vmov (!%p352_p3), 0  }
   0x8   : > { %1051 = vmatpush3.msra.mxu0 (!%p352_p3), %v477_v0  ;;  %1055 = vmatprep.subr.mxu1 (!%p352_p3), %v1130_v1  ;;  %v561_v5 = vld [vmem:[%s1263_s5] sm:$0xff] (!%p352_p3)  ;;  %470 = vst.msk [vmem:[#allocation3] sm:$0xff] (!%p352_p3), %vm469_vm2, %v1132_v19  ;;  %471 = vst.msk [vmem:[#allocation4] sm:$0xff] (!%p352_p3), %vm469_vm2, %v1130_v1 }
   0x9   : > { %1056 = vmatpush3.msra.mxu1 (!%p352_p3), %v477_v0  ;;  %1057 = vmatprep.mubr.msk.f32.mxu1 (!%p352_p3), %vm1131_vm1, %v1130_v1  ;;  %v476_v6 = vld [vmem:[%s1262_s4] sm:$0xff] (!%p352_p3)  ;;  %v720_v21 = vshrl.u32 (!%p352_p3), %v719_v20, 7  ;;  %v724_v22 = vand.u32 (!%p352_p3), 127, %v719_v20 }
   0xa   : > { %1060 = vmatprep.subr.mxu0 (!%p352_p3), %v1130_v1  ;;  %1065 = vmatprep.subr.mxu1 (!%p352_p3), %v1130_v1  ;;  %v562_v7 = vld [vmem:[%s1264_s6] sm:$0xff] (!%p352_p3) }
   0xb   : > { %vm727_vm3 = vcmp.le.s32.totalorder (!%p352_p3), %v724_v22, %v720_v21  ;;  %1098 = vset.pattern.permute.xlu0 (!%p352_p3), %v1133_v28  ;;  %1099 = vset.pattern.permute.xlu1 (!%p352_p3), %v1133_v28 }
   0xe   : > { %s1272_s27 = smov (!%p419_p4, %s1120_s27), 7  ;;  %v827_v50 = vld [vmem:[#allocation5] sm:$0xff] }
   0xf   : > { %s1203_s11 = sshll.u32 %s1272_s27, 3  ;;  %v729_v29 = vld [vmem:[#allocation3] sm:$0xff]  ;;  %v745_v41 = vld [vmem:[#allocation4] sm:$0xff] }
  0x10   : > { %s425_s14 = scalar_lea.vmem %s1258_s0, %s1203_s11  ;;  %s432_s17 = scalar_lea.vmem %s1259_s1, %s1203_s11 }
  0x11   : > { %v474_v2 = vld [vmem:[%s425_s14] sm:$0xff]  ;;  %s439_s9 = scalar_lea.vmem %s1260_s2, %s1203_s11  ;;  %s462_s13 = scalar_lea.vmem %s1266_s8, %s1203_s11 }
  0x12   : > { %v560_v3 = vld [vmem:[%s432_s17] sm:$0xff]  ;;  %1053 = vmatmul.mubr.msk.f32.vlgmr.msra.gmra.mrb[0].mxu0 %vm472_vm0, %v474_v2  ;;  %v551_v8 = vmul.f32 %v475_v4, %v474_v2 }
  0x13   : > { %1058 = vmatmul.mubr.msk.f32.vlgmr.msra.gmra.mrb[0].mxu1 %vm472_vm0, %v560_v3  ;;  %1062 = vmatprep.mubr.msk.f32.mxu0 %vm1131_vm1, %v1130_v1  ;;  %v638_v9 = vmul.f32 %v561_v5, %v560_v3  ;;  %v753_v33 = vld [vmem:[%s439_s9] sm:$0xff] }
  0x14   : > { %1067 = vmatprep.mubr.msk.f32.mxu1 %vm1131_vm1, %v1130_v1  ;;  %1066 = vmatpush3.msra.mxu1 %v753_v33 }
  0xe5   : > { %v547_v10 = vpop.f32.mrb[0].mxu0 }
  0xe6   : > { %v634_v11 = vpop.f32.mrb[0].mxu1  ;;  %v552_v12 = vmul.f32 %v547_v10, %v476_v6  ;;  %v1054_v13 = vpop.f32.mrb[1].mxu0 }
  0xe7   : > { %v639_v14 = vmul.f32 %v634_v11, %v562_v7  ;;  %v1059_v15 = vpop.f32.mrb[1].mxu1 }
  0xe8   : > { %v553_v16 = vadd.f32 %v552_v12, %v551_v8 }
  0xe9   : > { %v640_v17 = vadd.f32 %v639_v14, %v638_v9 }
  0xea   : > { %554 = vst.msk [vmem:[#allocation2] sm:$0xff] %vm472_vm0, %v553_v16 }
  0xeb   : > { %1061 = vmatpush3.xpose.msk.msra.mxu0 %vm472_vm0, %v640_v17 }
  0xf1   : > { %v641_v18 = vld [vmem:[#allocation2] sm:$0xff] }
  0xf2   : > { %1063 = vmatmul.mubr.msk.f32.vlgmr.msra.gmra.mrb[2].mxu0 %vm472_vm0, %v641_v18 }
 0x1c5   : > { %v714_v23 = vpop.f32.mrb[2].mxu0 }
 0x1c6   : > { %v718_v24 = vmul.f32 0.35355338, %v714_v23  ;;  %v1064_v25 = vpop.f32.mrb[3].mxu0 }
 0x1c8   : > { %v728_v26 = vsel %vm727_vm3, %v718_v24, -1e+30 }
 0x1c9   : > { %v730_v27 = vsel %vm472_vm0, %v728_v26, -inf }
 0x1ca   : > { %731 = vmax.xlane.f32.xlu0 %v730_v27 }
 0x257   : > { %v732_v30 = vpop.xlane.xlu0 %731 }
 0x258   : > { %v733_v31 = vmax.f32 %v729_v29, %v732_v30 }
 0x25a   : > { %v734_v32 = vsub.f32 %v729_v29, %v733_v31  ;;  %836 = vst.msk [vmem:[#allocation3] sm:$0xff] %vm469_vm2, %v733_v31  ;;  %739 = vperm.xlu0 %1098, %v733_v31  }
 0x25c   : > { %v735_v39 = vmul.f32 1.442695, %v734_v32 }
 0x2d9   : > { %v740_v34 = vpop.permute.xlu0 %739 }
 0x2da   : > { %v742_v35 = vsub.f32 %v728_v26, %v740_v34 }
 0x2dc   : > { %v743_v36 = vmul.f32 1.442695, %v742_v35 }
 0x2de   : > { %1100 = vpow2.f32 %v743_v36 }
 0x2df   : > { %1102 = vpow2.f32 %v735_v39 }
 0x2e8   : > { %v1101_v37 = vpop.eup %1100 }
 0x2e9   : > { %1068 = vmatmul.mubr.msk.f32.vlgmr.msra.gmra.mrb[2].mxu1 %vm472_vm0, %v1101_v37  ;;  %v747_v38 = vsel %vm472_vm0, %v1101_v37, 0.0  ;;  %v1103_v40 = vpop.eup %1102 }
 0x2ea   : > { %748 = vadd.xlane.f32.xlu1 %v747_v38  ;;  %v746_v42 = vmul.f32 %v1103_v40, %v745_v41 }
 0x2fb   : > { %830 = vperm.xlu1 %1099, %v1103_v40  }
 0x377   : > { %v749_v43 = vpop.xlane.xlu1 %748 }
 0x378   : > { %v750_v44 = vadd.f32 %v749_v43, %v746_v42 }
 0x37a   : > { %752 = vst.msk [vmem:[#allocation4] sm:$0xff] %vm469_vm2, %v750_v44 }
 0x37b   : > { %v831_v51 = vpop.permute.xlu1 %830 }
 0x37c   : > { %v833_v52 = vmul.f32 %v831_v51, %v827_v50 }
 0x381   : > { %v840_v45 = vld [vmem:[#allocation4] sm:$0xff] }
 0x382   : > { %1104 = vrcp.f32 %v840_v45 }
 0x38c   : > { %v1105_v46 = vpop.eup %1104 }
 0x38d   : > { %v842_v47 = vmul.f32 %v1105_v46, %v840_v45 }
 0x38f   : > { %v843_v48 = vsub.f32 2.0, %v842_v47 }
 0x391   : > { %v844_v49 = vmul.f32 %v1105_v46, %v843_v48 }
 0x393   : > { %848 = vperm.xlu1 %1099, %v844_v49  }
 0x3bc   : > { %v823_v53 = vpop.f32.mrb[2].mxu1 }
 0x3bd   : > { %v834_v54 = vadd.f32 %v833_v52, %v823_v53  ;;  %v1069_v55 = vpop.f32.mrb[3].mxu1 }
 0x3bf   : > { %835 = vst.msk [vmem:[#allocation5] sm:$0xff] %vm472_vm0, %v834_v54 }
 0x3c6   : > { %v845_v56 = vld [vmem:[#allocation5] sm:$0xff] }
 0x412   : > { %v849_v57 = vpop.permute.xlu1 %848 }
 0x413   : > { %v851_v58 = vmul.f32 %v849_v57, %v845_v56 }
 0x415   : > { %853 = vst.msk [vmem:[%s462_s13] sm:$0xff] %vm472_vm0, %v851_v58 }
 0x416 PF: > { %s18_s29 = sadd.s32 1, %s1128_s29   ;;  %s1267_s27 = smov %s1124_s28 }
 0x417   : > { %p15_p5 = scmp.ge.s32.totalorder %s18_s29, 10   ;;  %s1268_s28 = smov %s1270_s30 }
 0x419   :  { %17 = sbr.rel (!%p15_p5) target bundleno = 2 (0x2), region = 112 }

</bundles_post_ra>
